<compile_context>
chip_gen: v7x
topology: tpu7x:2x2x1
jax: 0.10.0
libtpu: 0.0.40
codegen_flags: <defaults>
</compile_context>

<pallas_src>
import math

import jax
import jax.numpy as jnp
from jax.experimental import pallas as pl
from jax.experimental.pallas import tpu as pltpu


# ---------------------------------------------------------------------------
# pe table construction (deterministic parameter setup — plain JAX glue)
# ---------------------------------------------------------------------------

def make_positional_encoding_table(d_model: int, max_len: int = 5000) -> jnp.ndarray:
    """pe of shape (max_len, d_model), matching the PyTorch buffer contents."""
    position = jnp.arange(0, max_len, dtype=jnp.float32)[:, None]            # (max_len, 1)
    div_term = jnp.exp(
        jnp.arange(0, d_model, 2, dtype=jnp.float32)
        * (-math.log(10000.0) / d_model)
    )                                                                         # (d_model/2,)
    angles = position * div_term                                              # (max_len, d_model/2)
    pe = jnp.zeros((max_len, d_model), dtype=jnp.float32)
    pe = pe.at[:, 0::2].set(jnp.sin(angles))
    pe = pe.at[:, 1::2].set(jnp.cos(angles))
    return pe


# ---------------------------------------------------------------------------
# Kernels (operate on lane-dense 2D blocks of shape (tile_s, B*D))
# ---------------------------------------------------------------------------

def _posenc_add_kernel(x_ref, pe_ref, o_ref):
    # Eval mode: x + pe (pe already tiled to (tile_s, B*D) — no in-kernel broadcast).
    o_ref[...] = x_ref[...] + pe_ref[...]


def _posenc_add_dropout_kernel(x_ref, pe_ref, m_ref, o_ref):
    # Training mode: fused add + inverted dropout. m_ref holds the pre-scaled
    # keep mask (0 or 1/(1-p)) in x's dtype.
    o_ref[...] = (x_ref[...] + pe_ref[...]) * m_ref[...]


# ---------------------------------------------------------------------------
# Wrapper
# ---------------------------------------------------------------------------

_TARGET_BLOCK_BYTES = 2 * 1024 * 1024   # ~2 MiB per buffer: safe for v5e's 16 MiB
                                        # scoped default and v7x's 64 MiB VMEM.


def _choose_tile_s(S: int, row_bytes: int) -> int:
    tile_s = max(1, _TARGET_BLOCK_BYTES // max(row_bytes, 1))
    if tile_s >= S:
        return S                        # full extent — no (8,) divisibility needed
    return max(8, (tile_s // 8) * 8)    # sublane-aligned tile


def positional_encoding_forward(
    x: jnp.ndarray,
    pe_table: jnp.ndarray,
    *,
    dropout_p: float = 0.1,
    training: bool = False,
    rng_key=None,
) -> jnp.ndarray:
    """x: (S, B, D).  pe_table: (max_len, D).  Returns (S, B, D)."""
    S, B, D = x.shape
    N = B * D
    dtype = x.dtype
    itemsize = jnp.dtype(dtype).itemsize

    apply_dropout = bool(training) and float(dropout_p) > 0.0
    if apply_dropout and float(dropout_p) >= 1.0:
        # Degenerate case (matches torch: everything dropped).
        return jnp.zeros_like(x)

    # Lane-dense flatten: (S, B, D) -> (S, B*D); pe broadcast over batch becomes
    # a per-row tile of pe[s] repeated B times.
    x2 = x.reshape(S, N)
    pe2 = jnp.tile(pe_table[:S, :].astype(dtype), (1, B))                     # (S, N)

    tile_s = _choose_tile_s(S, N * itemsize)
    n_tiles = -(-S // tile_s)            # cdiv
    S_pad = n_tiles * tile_s
    if S_pad != S:
        x2 = jnp.pad(x2, ((0, S_pad - S), (0, 0)))
        pe2 = jnp.pad(pe2, ((0, S_pad - S), (0, 0)))

    block_bytes = tile_s * N * itemsize
    n_bufs = 4 if apply_dropout else 3   # (x, pe[, mask], out), each double-buffered
    vmem_limit = int(min(max(2 * n_bufs * block_bytes + (1 << 20),
                             16 * 1024 * 1024),
                         48 * 1024 * 1024))

    blk = pl.BlockSpec((tile_s, N), lambda i: (i, 0))
    out_shape = jax.ShapeDtypeStruct((S_pad, N), dtype)
    cparams = pltpu.CompilerParams(
        dimension_semantics=("parallel",),
        vmem_limit_bytes=vmem_limit,
    )

    if not apply_dropout:
        out2 = pl.pallas_call(
            _posenc_add_kernel,
            out_shape=out_shape,
            grid_spec=pltpu.PrefetchScalarGridSpec(
                num_scalar_prefetch=0,
                grid=(n_tiles,),
                in_specs=[blk, blk],
                out_specs=blk,
            ),
            compiler_params=cparams,
        )(x2, pe2)
    else:
        if rng_key is None:
            rng_key = jax.random.PRNGKey(0)
        keep_p = 1.0 - float(dropout_p)
        keep = jax.random.bernoulli(rng_key, keep_p, (S_pad, N))
        mask = keep.astype(dtype) * jnp.asarray(1.0 / keep_p, dtype)          # pre-scaled
        out2 = pl.pallas_call(
            _posenc_add_dropout_kernel,
            out_shape=out_shape,
            grid_spec=pltpu.PrefetchScalarGridSpec(
                num_scalar_prefetch=0,
                grid=(n_tiles,),
                in_specs=[blk, blk, blk],
                out_specs=blk,
            ),
            compiler_params=cparams,
        )(x2, pe2, mask)

    return out2[:S].reshape(S, B, D)


# ---------------------------------------------------------------------------
# Main
# ---------------------------------------------------------------------------

if __name__ == "__main__":
    key = jax.random.PRNGKey(0)
    kx, kd = jax.random.split(key)

    S, B, D = 8, 2, 32                  # seq=8, batch=2, d_model=32
    max_len = 64

    x = jax.random.normal(kx, (S, B, D), dtype=jnp.float32)
    pe_table = make_positional_encoding_table(D, max_len)

    # Eval mode (dropout = identity) — exact check against pure JAX reference.
    out = positional_encoding_forward(x, pe_table, dropout_p=0.1, training=False)
    out = jax.block_until_ready(out)
    ref = x + pe_table[:S][:, None, :]
    assert out.shape == (S, B, D)
    assert jnp.allclose(out, ref, atol=1e-6), "eval-mode mismatch vs reference"

    # Training mode (fused add + inverted dropout) — every element must be
    # either 0 (dropped) or ref/(1-p) (kept & rescaled).
    p = 0.1
    out_tr = positional_encoding_forward(
        x, pe_table, dropout_p=p, training=True, rng_key=kd
    )
    out_tr = jax.block_until_ready(out_tr)
    assert out_tr.shape == (S, B, D)
    scaled = ref / (1.0 - p)
    ok = jnp.isclose(out_tr, 0.0, atol=1e-6) | jnp.isclose(out_tr, scaled, atol=1e-5)
    assert bool(jnp.all(ok)), "training-mode dropout output mismatch"

    print("KERNEL_OK")
</pallas_src>

<mosaic_0001>
module attributes {stable_mosaic.version = 11 : i64} {
  func.func @_posenc_add_kernel(%arg0: i32, %arg1: memref<8x64xf32, #tpu.memory_space<vmem>>, %arg2: memref<8x64xf32, #tpu.memory_space<vmem>>, %arg3: memref<8x64xf32, #tpu.memory_space<vmem>>) attributes {dimension_semantics = [#tpu.dimension_semantics<parallel>], iteration_bounds = array<i64: 1>, scalar_prefetch = 0 : i64, scratch_operands = 0 : i64, tpu.core_type = #tpu.core_type<tc>, window_params = [{transform_indices = @transform_0, window_bounds = array<i64: 8, 64>}, {transform_indices = @transform_1, window_bounds = array<i64: 8, 64>}, {transform_indices = @transform_2, window_bounds = array<i64: 8, 64>}]} {
    %c0 = arith.constant 0 : index
    %c0_0 = arith.constant 0 : index
    %0 = vector.load %arg1[%c0, %c0_0] : memref<8x64xf32, #tpu.memory_space<vmem>>, vector<8x64xf32>
    %c0_1 = arith.constant 0 : index
    %c0_2 = arith.constant 0 : index
    %1 = vector.load %arg2[%c0_1, %c0_2] : memref<8x64xf32, #tpu.memory_space<vmem>>, vector<8x64xf32>
    %2 = arith.addf %0, %1 : vector<8x64xf32>
    %c0_3 = arith.constant 0 : index
    %c0_4 = arith.constant 0 : index
    %3 = vector.load %arg3[%c0_3, %c0_4] : memref<8x64xf32, #tpu.memory_space<vmem>>, vector<8x64xf32>
    tpu.vector_store %arg3[%c0_3, %c0_4], %2 {strides = array<i32>} : memref<8x64xf32, #tpu.memory_space<vmem>>, vector<8x64xf32>,
    return
  }
  func.func @transform_0(%arg0: i32) -> (i32, i32) {
    %c0_i32 = arith.constant 0 : i32
    %c0_i32_0 = arith.constant 0 : i32
    return %arg0, %c0_i32 : i32, i32
  }
  func.func @transform_1(%arg0: i32) -> (i32, i32) {
    %c0_i32 = arith.constant 0 : i32
    %c0_i32_0 = arith.constant 0 : i32
    return %arg0, %c0_i32 : i32, i32
  }
  func.func @transform_2(%arg0: i32) -> (i32, i32) {
    %c0_i32 = arith.constant 0 : i32
    %c0_i32_0 = arith.constant 0 : i32
    return %arg0, %c0_i32 : i32, i32
  }
}

</mosaic_0001>

<bundles_post_ra>
// kernel: tpu_custom_call.1
= control target key start
LH: loop header
LB: loop body
LE: loop exit
PB: predicated region body
PF: predicated region fallthrough
CT: control target
= control target key end

     0   :  { %7 = vsyncpa [#allocation3], 0  ;;  %s186_s0 = inlined_call_operand.hbm [shape: f32[8,64], index: 0, kind: input, shape index: {}]   ;;  %s187_s1 = inlined_call_operand.hbm [shape: f32[8,64], index: 1, kind: input, shape index: {}]   ;;  %s188_s2 = inlined_call_operand.hbm [shape: f32[8,64], index: 2, kind: output, shape index: {}]  }
   0x1   :  { %8 = vsyncpa [#allocation6], 0 }
   0x2   :  { %9 = vsyncpa [#allocation4], 0  ;;  %s132_s9 = smov [#allocation2]   ;;  %s133_s11 = smov [#allocation5]  }
   0x3   :  { %s16_s10 = sshll.u32 %s132_s9, 4  ;;  %s26_s12 = sshll.u32 %s133_s11, 4  ;;  %s17_s10 = int_to_ptr.vmem [resolvable:$true] %s16_s10  ;;  %s27_s12 = int_to_ptr.vmem [resolvable:$true] %s26_s12 }
   0x4   :  { %s60_s15 = scalar_lea.hbm %s186_s0, 128 }
   0x5   :  { %p61_p0 = scmp.ne.s32.totalorder %s186_s0, %s60_s15  ;;  %p64_p1 = scmp.lt.u32.totalorder %s60_s15, %s186_s0 }
   0x7   :  { %p66_p2 = pnand %p64_p1, %p61_p0 }
   0x9   :  { %69 = shalt.err (!%p66_p2)
}
   0xa   :  { %s70_s20 = scalar_lea.vmem %s17_s10, 128  ;;  %p75_p4 = scmp.lt.s32.totalorder %s17_s10, %s17_s10 }
   0xb   :  { %p71_p3 = scmp.ne.s32.totalorder %s17_s10, %s70_s20  ;;  %p76_p5 = scmp.lt.s32.totalorder %s70_s20, %s70_s20 }
   0xd   :  { %p77_p6 = por %p76_p5, %p75_p4 }
   0xf   :  { %p78_p7 = pnand %p77_p6, %p71_p3 }
  0x11   :  { %81 = shalt.err (!%p78_p7)
}
  0x12   :  { %19 = dma.hbm_to_vmem [thread:$0]  %s186_s0, 128, %s17_s10, [#allocation3]  }
  0x13   :  { %s82_s25 = scalar_lea.hbm %s187_s1, 128 }
  0x14   :  { %p83_p8 = scmp.ne.s32.totalorder %s187_s1, %s82_s25  ;;  %p86_p9 = scmp.lt.u32.totalorder %s82_s25, %s187_s1 }
  0x16   :  { %p88_p10 = pnand %p86_p9, %p83_p8 }
  0x18   :  { %91 = shalt.err (!%p88_p10)
}
  0x19   :  { %s92_s30 = scalar_lea.vmem %s27_s12, 128  ;;  %p97_p12 = scmp.lt.s32.totalorder %s27_s12, %s27_s12 }
  0x1a   :  { %p93_p11 = scmp.ne.s32.totalorder %s27_s12, %s92_s30  ;;  %p98_p13 = scmp.lt.s32.totalorder %s92_s30, %s92_s30 }
  0x1c   :  { %p99_p0 = por %p98_p13, %p97_p12 }
  0x1e   :  { %p100_p1 = pnand %p99_p0, %p93_p11 }
  0x20   :  { %103 = shalt.err (!%p100_p1)
}
  0x21   :  { %29 = dma.hbm_to_vmem [thread:$0]  %s187_s1, 128, %s27_s12, [#allocation6]  }
  0x22   :  { %126 = dma.done.wait [#allocation3], 128  }
  0x23   :  { %127 = vsyncadd [#allocation3], 4294967168 }
  0x24   :  { %128 = dma.done.wait [#allocation6], 128  }
  0x25   :  { %129 = vsyncadd [#allocation6], 4294967168  ;;  %s134_s4 = smov [#allocation7]   ;;  %v36_v0 = vld [vmem:[#allocation2] sm:$0xff]  ;;  %v37_v1 = vld [vmem:[#allocation5] sm:$0xff]  ;;  %vm39_vm0 = vcmask 523264  }
  0x26   :  { %s47_s5 = sshll.u32 %s134_s4, 4  ;;  %v38_v2 = vadd.f32 %v37_v1, %v36_v0  ;;  %s48_s5 = int_to_ptr.vmem [resolvable:$true] %s47_s5 }
  0x27   :  { %s104_s6 = scalar_lea.vmem %s48_s5, 128  ;;  %p109_p3 = scmp.lt.s32.totalorder %s48_s5, %s48_s5 }
  0x28   :  { %40 = vst.msk [vmem:[#allocation7] sm:$0xff] %vm39_vm0, %v38_v2  ;;  %p105_p2 = scmp.ne.s32.totalorder %s48_s5, %s104_s6  ;;  %p110_p4 = scmp.lt.s32.totalorder %s104_s6, %s104_s6 }
  0x2a   :  { %p111_p5 = por %p110_p4, %p109_p3 }
  0x2c   :  { %p112_p6 = pnand %p111_p5, %p105_p2 }
  0x2e   :  { %115 = shalt.err (!%p112_p6)
}
  0x2f   :  { %s116_s8 = scalar_lea.hbm %s188_s2, 128 }
  0x30   :  { %p117_p7 = scmp.ne.s32.totalorder %s188_s2, %s116_s8  ;;  %p120_p8 = scmp.lt.u32.totalorder %s116_s8, %s188_s2 }
  0x32   :  { %p122_p9 = pnand %p120_p8, %p117_p7 }
  0x34   :  { %125 = shalt.err (!%p122_p9)
}
  0x35   :  { %50 = dma.vmem_to_hbm [thread:$0]  %s48_s5, 128, %s188_s2, [#allocation4]  }
  0x36   :  { %130 = dma.done.wait [#allocation4], 128  }
  0x37   :  { %131 = vsyncadd [#allocation4], 4294967168 }
  0x38   :  { %54 = vsyncpa [#allocation3], 1 }
  0x39   :  { %55 = vsyncpa [#allocation6], 1 }
  0x3a   :  { %56 = vsyncpa [#allocation4], 1 }

</bundles_post_ra>
